<compile_context>
chip_gen: v7x
topology: tpu7x:2x2x1
jax: 0.10.0
libtpu: 0.0.40
codegen_flags: <defaults>
</compile_context>

<pallas_src>
import jax
import jax.numpy as jnp
from jax import lax
from jax.experimental import pallas as pl
from jax.experimental.pallas import tpu as pltpu

KSIZE = 7
PAD = KSIZE // 2
EPS = 1e-5


# ----------------------------- kernel -----------------------------


def _cbam1d_kernel(x_ref, w1t_ref, b1_ref, w2t_ref, b2_ref, convw_ref,
                   gamma_ref, beta_ref, o_ref):
    x = x_ref[...].astype(jnp.float32)            # (Bt, C, L)
    Bt, C, L = x.shape

    # ---------------- Channel attention ----------------
    avg_c = jnp.mean(x, axis=2)                   # (Bt, C)  lane reduce
    max_c = jnp.max(x, axis=2)                    # (Bt, C)

    # Fused MLP: one fc1 / fc2 over both pooled branches at once.
    # rows [0:Bt] = avg branch, rows [Bt:2Bt] = max branch.
    rhs = jnp.concatenate([avg_c, max_c], axis=0)                      # (2*Bt, C)
    h = jnp.dot(rhs, w1t_ref[...], preferred_element_type=jnp.float32) + b1_ref[...]
    h = jnp.maximum(h, 0.0)                                            # ReLU (dropout = id)
    o = jnp.dot(h, w2t_ref[...], preferred_element_type=jnp.float32) + b2_ref[...]
    ch_scale = jax.nn.sigmoid(o[:Bt] + o[Bt:])                         # (Bt, C)
    x1 = x * ch_scale[:, :, None]                                      # broadcast over L

    # ---------------- Spatial attention ----------------
    sp_avg = jnp.mean(x1, axis=1)                 # (Bt, L)  sublane reduce
    sp_max = jnp.max(x1, axis=1)                  # (Bt, L)

    # 7-tap Conv1d(2 -> 1, no bias) on the tiny (Bt, L) pooled planes:
    # zero-pad the lane axis by PAD on each side and take 7 static slices.
    # Cost ~ slab/C; works for any L and in both compiled/interpret modes.
    zp = jnp.zeros((Bt, PAD), dtype=jnp.float32)
    pa = jnp.concatenate([zp, sp_avg, zp], axis=1)     # (Bt, L + 2*PAD)
    pm = jnp.concatenate([zp, sp_max, zp], axis=1)
    conv = jnp.zeros((Bt, L), dtype=jnp.float32)
    for k in range(KSIZE):                             # static unroll, 7 taps
        conv = conv + (convw_ref[0, k] * pa[:, k:k + L]
                       + convw_ref[1, k] * pm[:, k:k + L])
    sp_scale = jax.nn.sigmoid(conv)               # (Bt, L)   (dropout = id)

    # -------- LayerNorm over C, fused with the spatial scaling --------
    # x2 = x1 * sp_scale with sp_scale constant over C, hence exactly:
    #   mu(x2)  = sp_scale * sp_avg
    #   var(x2) = sp_scale^2 * mean_C((x1 - sp_avg)^2)          (biased, like torch)
    #   y = (x2 - mu) * rsqrt(var + eps) * gamma + beta
    #     = (x1 - sp_avg) * [sp_scale * rsqrt(sp_scale^2 * var1 + eps)] * gamma + beta
    d = x1 - sp_avg[:, None, :]                   # (Bt, C, L)
    var1 = jnp.mean(d * d, axis=1)                # (Bt, L)
    a = sp_scale * lax.rsqrt(sp_scale * sp_scale * var1 + EPS)   # (Bt, L)
    y = d * a[:, None, :] * gamma_ref[...] + beta_ref[...]

    o_ref[...] = y.astype(o_ref.dtype)


# ----------------------------- wrapper -----------------------------


def _vmem_capacity_bytes():
    """Per-core VMEM capacity; conservative 64 MiB (v7x) if the query fails."""
    try:
        info = pltpu.get_tpu_info()
        cap = getattr(info, "vmem_capacity_bytes", None)
        if cap:
            return int(cap)
    except Exception:
        pass
    return 64 * 1024 * 1024


def _vmem_limit_bytes(capacity):
    if capacity >= 128 * 1024 * 1024:        # v5e / v6e: plenty of headroom
        return 96 * 1024 * 1024
    return min(40 * 1024 * 1024, (capacity * 5) // 8)   # v7x: stay <= ~40 MiB


def _est_live_bytes(bt, C, L, itemsize):
    """Rough live-VMEM model for one grid step: double-buffered in+out blocks
    in the native dtype plus ~4 full-slab f32 temporaries (x, x1, d, y)."""
    n = bt * C * L
    return 4 * n * itemsize + 4 * n * 4


def _pick_bt(B, C, L, itemsize, vmem_limit, min_steps=4):
    """Largest divisor Bt of B fitting the VMEM budget, preferring
    >= min_steps grid steps (>= 2 per TensorCore on v7x) and Bt % 8 == 0."""
    budget = (vmem_limit * 3) // 5           # ~60% headroom for weights/pipeline slack
    divs = sorted((d for d in range(1, B + 1) if B % d == 0), reverse=True)

    def fits(d):
        return _est_live_bytes(d, C, L, itemsize) <= budget

    for need_steps in (min_steps, 2, 1):
        for prefer_mult8 in (True, False):
            for d in divs:
                if prefer_mult8 and d % 8 != 0:
                    continue
                if fits(d) and B // d >= need_steps:
                    return d
    return 1   # TODO(synk): L-tiled two-pass path when even Bt=1 exceeds budget.


def cbam1d(x, w1, b1, w2, b2, conv_w, gamma, beta, *, block_b=None):
    """x: (B, C, L); w1: (H, C); b1: (H,); w2: (C, H); b2: (C,);
    conv_w: (2, KSIZE); gamma/beta: (C,)."""
    B, C, L = x.shape
    H = w1.shape[0]

    vmem_cap = _vmem_capacity_bytes()
    vmem_limit = _vmem_limit_bytes(vmem_cap)
    Bt = block_b if block_b is not None else _pick_bt(B, C, L, x.dtype.itemsize, vmem_limit)
    assert B % Bt == 0, f"block_b={Bt} must divide B={B}"

    full2 = lambda b: (0, 0)
    full3 = lambda b: (0, 0, 0)

    return pl.pallas_call(
        _cbam1d_kernel,
        out_shape=jax.ShapeDtypeStruct((B, C, L), x.dtype),
        grid_spec=pltpu.PrefetchScalarGridSpec(
            num_scalar_prefetch=0,
            grid=(B // Bt,),
            in_specs=[
                pl.BlockSpec((Bt, C, L), lambda b: (b, 0, 0)),        # x slab
                pl.BlockSpec((C, H), full2),                          # fc1 weight^T
                pl.BlockSpec((1, H), full2),                          # fc1 bias
                pl.BlockSpec((H, C), full2),                          # fc2 weight^T
                pl.BlockSpec((1, C), full2),                          # fc2 bias
                pl.BlockSpec(memory_space=pltpu.MemorySpace.SMEM),    # conv1d weight (scalars)
                pl.BlockSpec((1, C, 1), full3),                       # LN gamma
                pl.BlockSpec((1, C, 1), full3),                       # LN beta
            ],
            out_specs=pl.BlockSpec((Bt, C, L), lambda b: (b, 0, 0)),
        ),
        compiler_params=pltpu.CompilerParams(
            dimension_semantics=("parallel",),
            vmem_limit_bytes=vmem_limit),
    )(x, w1.T, b1.reshape(1, H), w2.T, b2.reshape(1, C),
      conv_w, gamma.reshape(1, C, 1), beta.reshape(1, C, 1))


# ----------------------------- reference & test -----------------------------


def cbam1d_ref(x, w1, b1, w2, b2, conv_w, gamma, beta):
    """Pure-JAX reference mirroring the PyTorch forward (eval mode)."""
    B, C, L = x.shape
    avg = x.mean(-1)
    mx = x.max(-1)

    def mlp(v):
        return jnp.maximum(v @ w1.T + b1, 0.0) @ w2.T + b2

    s = jax.nn.sigmoid(mlp(avg) + mlp(mx))[:, :, None]
    x1 = x * s
    pooled = jnp.concatenate([x1.mean(1, keepdims=True),
                              x1.max(1, keepdims=True)], axis=1)      # (B, 2, L)
    padded = jnp.pad(pooled, ((0, 0), (0, 0), (PAD, PAD)))
    conv = jnp.zeros((B, 1, L), x.dtype)
    for k in range(KSIZE):
        conv = conv + jnp.sum(conv_w[None, :, k:k + 1] * padded[:, :, k:k + L],
                              axis=1, keepdims=True)
    x2 = x1 * jax.nn.sigmoid(conv)
    mu = x2.mean(1, keepdims=True)
    var = ((x2 - mu) ** 2).mean(1, keepdims=True)
    return (x2 - mu) / jnp.sqrt(var + EPS) * gamma[None, :, None] + beta[None, :, None]


def _run_case(key, B, C, L, rr):
    H = max(C // rr, 1)
    kx, k1, k2, k3, k4, k5, k6, k7 = jax.random.split(key, 8)
    x = jax.random.normal(kx, (B, C, L), dtype=jnp.float32)
    # Synthetic parameters with shapes matching the nn.Module __init__.
    w1 = jax.random.normal(k1, (H, C), dtype=jnp.float32) * 0.2         # fc1: C -> C//r
    b1 = jax.random.normal(k2, (H,), dtype=jnp.float32) * 0.1
    w2 = jax.random.normal(k3, (C, H), dtype=jnp.float32) * 0.2         # fc2: C//r -> C
    b2 = jax.random.normal(k4, (C,), dtype=jnp.float32) * 0.1
    conv_w = jax.random.normal(k5, (2, KSIZE), dtype=jnp.float32) * 0.3  # Conv1d(2,1,7,no bias)
    gamma = 1.0 + 0.1 * jax.random.normal(k6, (C,), dtype=jnp.float32)   # LayerNorm weight
    beta = 0.1 * jax.random.normal(k7, (C,), dtype=jnp.float32)          # LayerNorm bias

    out = jax.block_until_ready(cbam1d(x, w1, b1, w2, b2, conv_w, gamma, beta))
    ref = cbam1d_ref(x, w1, b1, w2, b2, conv_w, gamma, beta)
    assert out.shape == (B, C, L)
    assert jnp.allclose(out, ref, atol=1e-4, rtol=1e-4), \
        f"mismatch vs reference at B={B} C={C} L={L}"


if __name__ == "__main__":
    key = jax.random.PRNGKey(0)
    k_main, k_odd = jax.random.split(key)
    # Main case: lane-dense (L multiple of 128), B=4 -> 4 parallel grid steps.
    _run_case(k_main, B=4, C=16, L=128, rr=8)
    # Odd-shape case: L not a multiple of 128 and odd B -> exercises the
    # non-aligned conv slicing and Bt=1 tiling.
    _run_case(k_odd, B=3, C=16, L=48, rr=8)
    print("KERNEL_OK")
</pallas_src>

<mosaic_0001>
module attributes {stable_mosaic.version = 11 : i64} {
  func.func @_cbam1d_kernel(%arg0: i32, %arg1: memref<1x16x128xf32, #tpu.memory_space<vmem>>, %arg2: memref<16x2xf32, #tpu.memory_space<vmem>>, %arg3: memref<1x2xf32, #tpu.memory_space<vmem>>, %arg4: memref<2x16xf32, #tpu.memory_space<vmem>>, %arg5: memref<1x16xf32, #tpu.memory_space<vmem>>, %arg6: memref<2x7xf32, #tpu.memory_space<smem>>, %arg7: memref<1x16x1xf32, #tpu.memory_space<vmem>>, %arg8: memref<1x16x1xf32, #tpu.memory_space<vmem>>, %arg9: memref<1x16x128xf32, #tpu.memory_space<vmem>>) attributes {dimension_semantics = [#tpu.dimension_semantics<parallel>], iteration_bounds = array<i64: 4>, scalar_prefetch = 0 : i64, scratch_operands = 0 : i64, tpu.core_type = #tpu.core_type<tc>, window_params = [{transform_indices = @transform_0, window_bounds = array<i64: 1, 16, 128>}, {pipeline_mode = #tpu.pipeline_mode<synchronous>, transform_indices = @transform_1, window_bounds = array<i64: 16, 2>}, {pipeline_mode = #tpu.pipeline_mode<synchronous>, transform_indices = @transform_2, window_bounds = array<i64: 1, 2>}, {pipeline_mode = #tpu.pipeline_mode<synchronous>, transform_indices = @transform_3, window_bounds = array<i64: 2, 16>}, {pipeline_mode = #tpu.pipeline_mode<synchronous>, transform_indices = @transform_4, window_bounds = array<i64: 1, 16>}, {transform_indices = @transform_5, window_bounds = array<i64: 2, 7>}, {pipeline_mode = #tpu.pipeline_mode<synchronous>, transform_indices = @transform_6, window_bounds = array<i64: 1, 16, 1>}, {pipeline_mode = #tpu.pipeline_mode<synchronous>, transform_indices = @transform_7, window_bounds = array<i64: 1, 16, 1>}, {transform_indices = @transform_8, window_bounds = array<i64: 1, 16, 128>}]} {
    %c0 = arith.constant 0 : index
    %c0_0 = arith.constant 0 : index
    %c0_1 = arith.constant 0 : index
    %0 = vector.load %arg1[%c0, %c0_0, %c0_1] : memref<1x16x128xf32, #tpu.memory_space<vmem>>, vector<1x16x128xf32>
    %cst = arith.constant dense<0.000000e+00> : vector<1x16xf32>
    %1 = vector.multi_reduction <add>, %0, %cst [2] : vector<1x16x128xf32> to vector<1x16xf32>
    %cst_2 = arith.constant 1.280000e+02 : f32
    %2 = vector.broadcast %cst_2 : f32 to vector<1x16xf32>
    %3 = arith.divf %1, %2 : vector<1x16xf32>
    %cst_3 = arith.constant dense<0xFF800000> : vector<1x16xf32>
    %4 = vector.multi_reduction <maximumf>, %0, %cst_3 [2] : vector<1x16x128xf32> to vector<1x16xf32>
    %5 = tpu.concatenate %3, %4 in 0 : vector<1x16xf32>, vector<1x16xf32> -> vector<2x16xf32>
    %c0_4 = arith.constant 0 : index
    %c0_5 = arith.constant 0 : index
    %6 = vector.load %arg2[%c0_4, %c0_5] : memref<16x2xf32, #tpu.memory_space<vmem>>, vector<16x2xf32>
    %cst_6 = arith.constant dense<0.000000e+00> : vector<2x2xf32>
    %7 = tpu.matmul %5, %6, %cst_6 {dimension_numbers = #tpu.dot_dimension_numbers<[1], [0], [0], [1], [0, 0, 1, 1], [], []>} : vector<2x16xf32>, vector<16x2xf32>, vector<2x2xf32> -> vector<2x2xf32>
    %c0_7 = arith.constant 0 : index
    %c0_8 = arith.constant 0 : index
    %8 = vector.load %arg3[%c0_7, %c0_8] : memref<1x2xf32, #tpu.memory_space<vmem>>, vector<1x2xf32>
    %9 = vector.broadcast %8 : vector<1x2xf32> to vector<2x2xf32>
    %10 = arith.addf %7, %9 : vector<2x2xf32>
    %cst_9 = arith.constant 0.000000e+00 : f32
    %11 = vector.broadcast %cst_9 : f32 to vector<2x2xf32>
    %12 = arith.maximumf %10, %11 : vector<2x2xf32>
    %c0_10 = arith.constant 0 : index
    %c0_11 = arith.constant 0 : index
    %13 = vector.load %arg4[%c0_10, %c0_11] : memref<2x16xf32, #tpu.memory_space<vmem>>, vector<2x16xf32>
    %cst_12 = arith.constant dense<0.000000e+00> : vector<2x16xf32>
    %14 = tpu.matmul %12, %13, %cst_12 {dimension_numbers = #tpu.dot_dimension_numbers<[1], [0], [0], [1], [0, 0, 1, 1], [], []>} : vector<2x2xf32>, vector<2x16xf32>, vector<2x16xf32> -> vector<2x16xf32>
    %c0_13 = arith.constant 0 : index
    %c0_14 = arith.constant 0 : index
    %15 = vector.load %arg5[%c0_13, %c0_14] : memref<1x16xf32, #tpu.memory_space<vmem>>, vector<1x16xf32>
    %16 = vector.broadcast %15 : vector<1x16xf32> to vector<2x16xf32>
    %17 = arith.addf %14, %16 : vector<2x16xf32>
    %18 = vector.extract_strided_slice %17 {offsets = [0, 0], sizes = [1, 16], strides = [1, 1]} : vector<2x16xf32> to vector<1x16xf32>
    %19 = vector.extract_strided_slice %17 {offsets = [1, 0], sizes = [1, 16], strides = [1, 1]} : vector<2x16xf32> to vector<1x16xf32>
    %20 = arith.addf %18, %19 : vector<1x16xf32>
    %21 = arith.negf %20 : vector<1x16xf32>
    %22 = math.exp %21 : vector<1x16xf32>
    %cst_15 = arith.constant 1.000000e+00 : f32
    %23 = vector.broadcast %cst_15 : f32 to vector<1x16xf32>
    %24 = arith.addf %23, %22 : vector<1x16xf32>
    %25 = arith.divf %23, %24 : vector<1x16xf32>
    %26 = vector.shape_cast %25 : vector<1x16xf32> to vector<1x16x1xf32>
    %27 = vector.broadcast %26 : vector<1x16x1xf32> to vector<1x16x128xf32>
    %28 = arith.mulf %0, %27 : vector<1x16x128xf32>
    %cst_16 = arith.constant dense<0.000000e+00> : vector<1x128xf32>
    %29 = vector.multi_reduction <add>, %28, %cst_16 [1] : vector<1x16x128xf32> to vector<1x128xf32>
    %cst_17 = arith.constant 1.600000e+01 : f32
    %30 = vector.broadcast %cst_17 : f32 to vector<1x128xf32>
    %31 = arith.divf %29, %30 : vector<1x128xf32>
    %cst_18 = arith.constant dense<0xFF800000> : vector<1x128xf32>
    %32 = vector.multi_reduction <maximumf>, %28, %cst_18 [1] : vector<1x16x128xf32> to vector<1x128xf32>
    %cst_19 = arith.constant 0.000000e+00 : f32
    %33 = vector.broadcast %cst_19 : f32 to vector<1x3xf32>
    %34 = tpu.concatenate %33, %31, %33 in 1 : vector<1x3xf32>, vector<1x128xf32>, vector<1x3xf32> -> vector<1x134xf32>
    %35 = tpu.concatenate %33, %32, %33 in 1 : vector<1x3xf32>, vector<1x128xf32>, vector<1x3xf32> -> vector<1x134xf32>
    %cst_20 = arith.constant 0.000000e+00 : f32
    %36 = vector.broadcast %cst_20 : f32 to vector<1x128xf32>
    %c0_21 = arith.constant 0 : index
    %c0_22 = arith.constant 0 : index
    %37 = memref.load %arg6[%c0_21, %c0_22] : memref<2x7xf32, #tpu.memory_space<smem>>
    %38 = vector.extract_strided_slice %34 {offsets = [0, 0], sizes = [1, 128], strides = [1, 1]} : vector<1x134xf32> to vector<1x128xf32>
    %39 = vector.broadcast %37 : f32 to vector<1x128xf32>
    %40 = arith.mulf %39, %38 : vector<1x128xf32>
    %c1 = arith.constant 1 : index
    %c0_23 = arith.constant 0 : index
    %41 = memref.load %arg6[%c1, %c0_23] : memref<2x7xf32, #tpu.memory_space<smem>>
    %42 = vector.extract_strided_slice %35 {offsets = [0, 0], sizes = [1, 128], strides = [1, 1]} : vector<1x134xf32> to vector<1x128xf32>
    %43 = vector.broadcast %41 : f32 to vector<1x128xf32>
    %44 = arith.mulf %43, %42 : vector<1x128xf32>
    %45 = arith.addf %40, %44 : vector<1x128xf32>
    %46 = arith.addf %36, %45 : vector<1x128xf32>
    %c0_24 = arith.constant 0 : index
    %c1_25 = arith.constant 1 : index
    %47 = memref.load %arg6[%c0_24, %c1_25] : memref<2x7xf32, #tpu.memory_space<smem>>
    %48 = vector.extract_strided_slice %34 {offsets = [0, 1], sizes = [1, 128], strides = [1, 1]} : vector<1x134xf32> to vector<1x128xf32>
    %49 = vector.broadcast %47 : f32 to vector<1x128xf32>
    %50 = arith.mulf %49, %48 : vector<1x128xf32>
    %c1_26 = arith.constant 1 : index
    %c1_27 = arith.constant 1 : index
    %51 = memref.load %arg6[%c1_26, %c1_27] : memref<2x7xf32, #tpu.memory_space<smem>>
    %52 = vector.extract_strided_slice %35 {offsets = [0, 1], sizes = [1, 128], strides = [1, 1]} : vector<1x134xf32> to vector<1x128xf32>
    %53 = vector.broadcast %51 : f32 to vector<1x128xf32>
    %54 = arith.mulf %53, %52 : vector<1x128xf32>
    %55 = arith.addf %50, %54 : vector<1x128xf32>
    %56 = arith.addf %46, %55 : vector<1x128xf32>
    %c0_28 = arith.constant 0 : index
    %c2 = arith.constant 2 : index
    %57 = memref.load %arg6[%c0_28, %c2] : memref<2x7xf32, #tpu.memory_space<smem>>
    %58 = vector.extract_strided_slice %34 {offsets = [0, 2], sizes = [1, 128], strides = [1, 1]} : vector<1x134xf32> to vector<1x128xf32>
    %59 = vector.broadcast %57 : f32 to vector<1x128xf32>
    %60 = arith.mulf %59, %58 : vector<1x128xf32>
    %c1_29 = arith.constant 1 : index
    %c2_30 = arith.constant 2 : index
    %61 = memref.load %arg6[%c1_29, %c2_30] : memref<2x7xf32, #tpu.memory_space<smem>>
    %62 = vector.extract_strided_slice %35 {offsets = [0, 2], sizes = [1, 128], strides = [1, 1]} : vector<1x134xf32> to vector<1x128xf32>
    %63 = vector.broadcast %61 : f32 to vector<1x128xf32>
    %64 = arith.mulf %63, %62 : vector<1x128xf32>
    %65 = arith.addf %60, %64 : vector<1x128xf32>
    %66 = arith.addf %56, %65 : vector<1x128xf32>
    %c0_31 = arith.constant 0 : index
    %c3 = arith.constant 3 : index
    %67 = memref.load %arg6[%c0_31, %c3] : memref<2x7xf32, #tpu.memory_space<smem>>
    %68 = vector.extract_strided_slice %34 {offsets = [0, 3], sizes = [1, 128], strides = [1, 1]} : vector<1x134xf32> to vector<1x128xf32>
    %69 = vector.broadcast %67 : f32 to vector<1x128xf32>
    %70 = arith.mulf %69, %68 : vector<1x128xf32>
    %c1_32 = arith.constant 1 : index
    %c3_33 = arith.constant 3 : index
    %71 = memref.load %arg6[%c1_32, %c3_33] : memref<2x7xf32, #tpu.memory_space<smem>>
    %72 = vector.extract_strided_slice %35 {offsets = [0, 3], sizes = [1, 128], strides = [1, 1]} : vector<1x134xf32> to vector<1x128xf32>
    %73 = vector.broadcast %71 : f32 to vector<1x128xf32>
    %74 = arith.mulf %73, %72 : vector<1x128xf32>
    %75 = arith.addf %70, %74 : vector<1x128xf32>
    %76 = arith.addf %66, %75 : vector<1x128xf32>
    %c0_34 = arith.constant 0 : index
    %c4 = arith.constant 4 : index
    %77 = memref.load %arg6[%c0_34, %c4] : memref<2x7xf32, #tpu.memory_space<smem>>
    %78 = vector.extract_strided_slice %34 {offsets = [0, 4], sizes = [1, 128], strides = [1, 1]} : vector<1x134xf32> to vector<1x128xf32>
    %79 = vector.broadcast %77 : f32 to vector<1x128xf32>
    %80 = arith.mulf %79, %78 : vector<1x128xf32>
    %c1_35 = arith.constant 1 : index
    %c4_36 = arith.constant 4 : index
    %81 = memref.load %arg6[%c1_35, %c4_36] : memref<2x7xf32, #tpu.memory_space<smem>>
    %82 = vector.extract_strided_slice %35 {offsets = [0, 4], sizes = [1, 128], strides = [1, 1]} : vector<1x134xf32> to vector<1x128xf32>
    %83 = vector.broadcast %81 : f32 to vector<1x128xf32>
    %84 = arith.mulf %83, %82 : vector<1x128xf32>
    %85 = arith.addf %80, %84 : vector<1x128xf32>
    %86 = arith.addf %76, %85 : vector<1x128xf32>
    %c0_37 = arith.constant 0 : index
    %c5 = arith.constant 5 : index
    %87 = memref.load %arg6[%c0_37, %c5] : memref<2x7xf32, #tpu.memory_space<smem>>
    %88 = vector.extract_strided_slice %34 {offsets = [0, 5], sizes = [1, 128], strides = [1, 1]} : vector<1x134xf32> to vector<1x128xf32>
    %89 = vector.broadcast %87 : f32 to vector<1x128xf32>
    %90 = arith.mulf %89, %88 : vector<1x128xf32>
    %c1_38 = arith.constant 1 : index
    %c5_39 = arith.constant 5 : index
    %91 = memref.load %arg6[%c1_38, %c5_39] : memref<2x7xf32, #tpu.memory_space<smem>>
    %92 = vector.extract_strided_slice %35 {offsets = [0, 5], sizes = [1, 128], strides = [1, 1]} : vector<1x134xf32> to vector<1x128xf32>
    %93 = vector.broadcast %91 : f32 to vector<1x128xf32>
    %94 = arith.mulf %93, %92 : vector<1x128xf32>
    %95 = arith.addf %90, %94 : vector<1x128xf32>
    %96 = arith.addf %86, %95 : vector<1x128xf32>
    %c0_40 = arith.constant 0 : index
    %c6 = arith.constant 6 : index
    %97 = memref.load %arg6[%c0_40, %c6] : memref<2x7xf32, #tpu.memory_space<smem>>
    %98 = vector.extract_strided_slice %34 {offsets = [0, 6], sizes = [1, 128], strides = [1, 1]} : vector<1x134xf32> to vector<1x128xf32>
    %99 = vector.broadcast %97 : f32 to vector<1x128xf32>
    %100 = arith.mulf %99, %98 : vector<1x128xf32>
    %c1_41 = arith.constant 1 : index
    %c6_42 = arith.constant 6 : index
    %101 = memref.load %arg6[%c1_41, %c6_42] : memref<2x7xf32, #tpu.memory_space<smem>>
    %102 = vector.extract_strided_slice %35 {offsets = [0, 6], sizes = [1, 128], strides = [1, 1]} : vector<1x134xf32> to vector<1x128xf32>
    %103 = vector.broadcast %101 : f32 to vector<1x128xf32>
    %104 = arith.mulf %103, %102 : vector<1x128xf32>
    %105 = arith.addf %100, %104 : vector<1x128xf32>
    %106 = arith.addf %96, %105 : vector<1x128xf32>
    %107 = arith.negf %106 : vector<1x128xf32>
    %108 = math.exp %107 : vector<1x128xf32>
    %cst_43 = arith.constant 1.000000e+00 : f32
    %109 = vector.broadcast %cst_43 : f32 to vector<1x128xf32>
    %110 = arith.addf %109, %108 : vector<1x128xf32>
    %111 = arith.divf %109, %110 : vector<1x128xf32>
    %112 = vector.shape_cast %31 : vector<1x128xf32> to vector<1x1x128xf32>
    %113 = vector.broadcast %112 : vector<1x1x128xf32> to vector<1x16x128xf32>
    %114 = arith.subf %28, %113 : vector<1x16x128xf32>
    %115 = arith.mulf %114, %114 : vector<1x16x128xf32>
    %cst_44 = arith.constant dense<0.000000e+00> : vector<1x128xf32>
    %116 = vector.multi_reduction <add>, %115, %cst_44 [1] : vector<1x16x128xf32> to vector<1x128xf32>
    %cst_45 = arith.constant 1.600000e+01 : f32
    %117 = vector.broadcast %cst_45 : f32 to vector<1x128xf32>
    %118 = arith.divf %116, %117 : vector<1x128xf32>
    %119 = arith.mulf %111, %111 : vector<1x128xf32>
    %120 = arith.mulf %119, %118 : vector<1x128xf32>
    %cst_46 = arith.constant 9.99999974E-6 : f32
    %121 = vector.broadcast %cst_46 : f32 to vector<1x128xf32>
    %122 = arith.addf %120, %121 : vector<1x128xf32>
    %123 = math.rsqrt %122 : vector<1x128xf32>
    %124 = arith.mulf %111, %123 : vector<1x128xf32>
    %125 = vector.shape_cast %124 : vector<1x128xf32> to vector<1x1x128xf32>
    %126 = vector.broadcast %125 : vector<1x1x128xf32> to vector<1x16x128xf32>
    %127 = arith.mulf %114, %126 : vector<1x16x128xf32>
    %c0_47 = arith.constant 0 : index
    %c0_48 = arith.constant 0 : index
    %c0_49 = arith.constant 0 : index
    %128 = vector.load %arg7[%c0_47, %c0_48, %c0_49] : memref<1x16x1xf32, #tpu.memory_space<vmem>>, vector<1x16x1xf32>
    %129 = vector.broadcast %128 : vector<1x16x1xf32> to vector<1x16x128xf32>
    %130 = arith.mulf %127, %129 : vector<1x16x128xf32>
    %c0_50 = arith.constant 0 : index
    %c0_51 = arith.constant 0 : index
    %c0_52 = arith.constant 0 : index
    %131 = vector.load %arg8[%c0_50, %c0_51, %c0_52] : memref<1x16x1xf32, #tpu.memory_space<vmem>>, vector<1x16x1xf32>
    %132 = vector.broadcast %131 : vector<1x16x1xf32> to vector<1x16x128xf32>
    %133 = arith.addf %130, %132 : vector<1x16x128xf32>
    %c0_53 = arith.constant 0 : index
    %c0_54 = arith.constant 0 : index
    %c0_55 = arith.constant 0 : index
    %134 = vector.load %arg9[%c0_53, %c0_54, %c0_55] : memref<1x16x128xf32, #tpu.memory_space<vmem>>, vector<1x16x128xf32>
    tpu.vector_store %arg9[%c0_53, %c0_54, %c0_55], %133 {strides = array<i32>} : memref<1x16x128xf32, #tpu.memory_space<vmem>>, vector<1x16x128xf32>,
    return
  }
  func.func @transform_0(%arg0: i32) -> (i32, i32, i32) {
    %c0_i32 = arith.constant 0 : i32
    %c0_i32_0 = arith.constant 0 : i32
    %c0_i32_1 = arith.constant 0 : i32
    return %arg0, %c0_i32, %c0_i32_0 : i32, i32, i32
  }
  func.func @transform_1(%arg0: i32) -> (i32, i32) {
    %c0_i32 = arith.constant 0 : i32
    %c0_i32_0 = arith.constant 0 : i32
    %c0_i32_1 = arith.constant 0 : i32
    return %c0_i32, %c0_i32_0 : i32, i32
  }
  func.func @transform_2(%arg0: i32) -> (i32, i32) {
    %c0_i32 = arith.constant 0 : i32
    %c0_i32_0 = arith.constant 0 : i32
    %c0_i32_1 = arith.constant 0 : i32
    return %c0_i32, %c0_i32_0 : i32, i32
  }
  func.func @transform_3(%arg0: i32) -> (i32, i32) {
    %c0_i32 = arith.constant 0 : i32
    %c0_i32_0 = arith.constant 0 : i32
    %c0_i32_1 = arith.constant 0 : i32
    return %c0_i32, %c0_i32_0 : i32, i32
  }
  func.func @transform_4(%arg0: i32) -> (i32, i32) {
    %c0_i32 = arith.constant 0 : i32
    %c0_i32_0 = arith.constant 0 : i32
    %c0_i32_1 = arith.constant 0 : i32
    return %c0_i32, %c0_i32_0 : i32, i32
  }
  func.func @transform_5(%arg0: i32) -> (i32, i32) {
    %c0_i32 = arith.constant 0 : i32
    %c0_i32_0 = arith.constant 0 : i32
    %c0_i32_1 = arith.constant 0 : i32
    return %c0_i32, %c0_i32_0 : i32, i32
  }
  func.func @transform_6(%arg0: i32) -> (i32, i32, i32) {
    %c0_i32 = arith.constant 0 : i32
    %c0_i32_0 = arith.constant 0 : i32
    %c0_i32_1 = arith.constant 0 : i32
    %c0_i32_2 = arith.constant 0 : i32
    return %c0_i32, %c0_i32_0, %c0_i32_1 : i32, i32, i32
  }
  func.func @transform_7(%arg0: i32) -> (i32, i32, i32) {
    %c0_i32 = arith.constant 0 : i32
    %c0_i32_0 = arith.constant 0 : i32
    %c0_i32_1 = arith.constant 0 : i32
    %c0_i32_2 = arith.constant 0 : i32
    return %c0_i32, %c0_i32_0, %c0_i32_1 : i32, i32, i32
  }
  func.func @transform_8(%arg0: i32) -> (i32, i32, i32) {
    %c0_i32 = arith.constant 0 : i32
    %c0_i32_0 = arith.constant 0 : i32
    %c0_i32_1 = arith.constant 0 : i32
    return %arg0, %c0_i32, %c0_i32_0 : i32, i32, i32
  }
}

</mosaic_0001>

<bundles_post_ra>
// kernel: tpu_custom_call.1
= control target key start
LH: loop header
LB: loop body
LE: loop exit
PB: predicated region body
PF: predicated region fallthrough
CT: control target
= control target key end

     0   :  { %s1532_s0 = inlined_call_operand.hbm [shape: f32[4,16,128], index: 0, kind: input, shape index: {}]   ;;  %s1533_s1 = inlined_call_operand.vmem [shape: f32[16,2], index: 1, kind: input, shape index: {}]   ;;  %s1534_s2 = inlined_call_operand.vmem [shape: f32[1,2], index: 2, kind: input, shape index: {}]   ;;  %s1535_s3 = inlined_call_operand.vmem [shape: f32[2,16], index: 3, kind: input, shape index: {}]   ;;  %s1536_s4 = inlined_call_operand.vmem [shape: f32[1,16], index: 4, kind: input, shape index: {}]   ;;  %s1537_s5 = inlined_call_operand.vmem [shape: f32[2,7], index: 5, kind: input, shape index: {}]   ;;  %s1538_s6 = inlined_call_operand.vmem [shape: f32[1,16,1], index: 6, kind: input, shape index: {}]   ;;  %s1539_s7 = inlined_call_operand.vmem [shape: f32[1,16,1], index: 7, kind: input, shape index: {}]   ;;  %s1540_s8 = inlined_call_operand.hbm [shape: f32[4,16,128], index: 8, kind: output, shape index: {}]  }
   0x1   :  { %1544 = sst [smem:[#allocation12_spill]] %s1537_s5 }
   0x2   :  { %13 = vsyncpa [#allocation3], 0 }
   0x3   :  { %15 = vsyncpa [#allocation3 + $0x1], 0 }
   0x4   :  { %16 = vsyncpa [#allocation5], 0 }
   0x5   :  { %17 = vsyncpa [#allocation4], 0 }
   0x6   :  { %19 = vsyncpa [#allocation4 + $0x1], 0  ;;  %s1211_s27 = smov 0   ;;  %s1213_s28 = smov 0  }
   0x7   :  { %s1215_s29 = smov 0   ;;  %s1217_s30 = smov 0  }
   0x8 LB: > { %s1232_s9 = sadd.s32 4294967295, %s1146_s30   ;;  %s889_s10 = sadd.s32 4294967294, %s1146_s30   ;;  %s1146_s30 = sphi %s1217_s30, %s1563_s30   ;;  %s1142_s29 = sphi %s1215_s29, %s1562_s29   ;;  %s1138_s28 = sphi %s1213_s28, %s1561_s28   ;;  %s1134_s27 = sphi %s1211_s27, %s1560_s27  }
   0x9   : > { %s1236_s11 = sadd.s32 1, %s1146_s30   ;;  %s32_s12 = sadd.s32 1, %s1142_s29 }
   0xa   : > { %s29_s13 = ssub.s32 %s1146_s30, %s1236_s11  ;;  %p39_p0 = scmp.ne.s32.totalorder %s1142_s29, %s1138_s28 }
   0xb   : > { %p30_p1 = scmp.eq.s32.totalorder %s29_s13, 0  ;;  %p40_p2 = scmp.eq.s32.totalorder %s1146_s30, 0 }
   0xc   : > { %p45_p3 = scmp.ne.s32.totalorder %s1138_s28, %s1134_s27  ;;  %p1542_p4 = scmp.eq.s32.totalorder %s1232_s9, 0 }
   0xd   : > { %s1248_s14 = scalar_select %p30_p1, %s1142_s29, %s32_s12  }
   0xe   : > { %p1250_p5 = por %p40_p2, %p39_p0  ;;  %p1256_p6 = por %p1542_p4, %p45_p3 }
   0xf   : > { %1545 = sst [smem:[#allocation11_spill]] %s1248_s14  ;;  %p216_p7 = scmp.eq.s32.totalorder %s1232_s9, 3 }
  0x10   : > { %s1547_s16 = scalar_select %p1256_p6, 1, 0 }
  0x11   : > { %p222_p8 = scmp.eq.s32.totalorder %s889_s10, 3  ;;  %p890_p9 = scmp.ge.s32.totalorder %s1146_s30, 1 }
  0x12   : > { %p229_p10 = scmp.lt.s32.totalorder %s1146_s30, 5  ;;  %p1263_p11 = por %p216_p7, %p39_p0 }
  0x13   : > { %p1267_p12 = por %p222_p8, %p45_p3  ;;  %s1551_s5 = sld [smem:[#allocation12_spill]] }
  0x14   : > { %s1548_s17 = scalar_select %p1263_p11, 1, 0 }
  0x15   : > { %s1549_s18 = scalar_select %p1267_p12, 1, 0 }
  0x16   : > { %p1271_p13 = pnand %p890_p9, %p229_p10  ;;  %p968_p0 = scmp.lt.s32.totalorder %s1146_s30, 4 }
  0x17   : > { %s271_s24 = sand.u32 1, %s1142_s29  }
  0x18   : > { %p955_p1 = pneg %p1271_p13  ;;  %p1290_p3 = pnand %p968_p0, %p1250_p5 }
  0x19   : > { %s254_s22 = sshll.u32 %s1551_s5, 4  ;;  %s893_s26 = sshll.u32 %s271_s24, 4  ;;  %s255_s22 = int_to_ptr.vmem [resolvable:$true] %s254_s22 }
  0x1a   : > { %p1283_p2 = pnand %p955_p1, %p1542_p4  ;;  %s1031_s10 = scalar_lea.vmem %s255_s22, 32 }
  0x1b   : > { %p1032_p7 = scmp.ne.s32.totalorder %s255_s22, %s1031_s10  ;;  %p1039_p12 = scmp.lt.s32.totalorder %s255_s22, %s255_s22 }
  0x1c   : > { %p1033_p8 = pneg %p1283_p2  ;;  %p1040_p11 = scmp.lt.s32.totalorder %s1031_s10, %s1031_s10 }
  0x1e   : > { %p1034_p9 = pnand %p1033_p8, %p1032_p7  ;;  %p1041_p1 = por %p1040_p11, %p1039_p12 }
  0x20   : > { %p1035_p10 = pneg %p1034_p9 }
  0x22   : > { %p1042_p4 = pnand %p1041_p1, %p1035_p10 }
  0x24   : > { %1045 = shalt.err (!%p1042_p4)
}
  0x25   : > { %s1148_s12 = smov [#allocation6]   ;;  %s925_s13 = sshll.u32 %s1146_s30, 8 }
  0x26   : > { %958 = dma.vmem_to_smem (!%p1283_p2), %s255_s22, 32, %s1148_s12, [#allocation5]  }
  0x27   : > { %s275_s15 = scalar_lea.vmem [#allocation2], %s893_s26  ;;  %s1302_s14 = scalar_lea.hbm %s1532_s0, %s925_s13 }
  0x28   : > { %s282_s20 = sshll.u32 %s275_s15, 4  ;;  %s1306_s10 = scalar_lea.sflag [#allocation3], %s271_s24  ;;  %s1304_s20 = int_to_ptr.vmem [resolvable:$true] %s282_s20 }
  0x29   : > { %s1046_s23 = scalar_lea.hbm %s1302_s14, 256  ;;  %p1048_p5 = pneg %p1290_p3 }
  0x2a   : > { %p1047_p4 = scmp.ne.s32.totalorder %s1302_s14, %s1046_s23  ;;  %s1051_s26 = scalar_lea.hbm %s1532_s0, 1024 }
  0x2b   : > { %p1052_p0 = scmp.lt.u32.totalorder %s1302_s14, %s1532_s0  ;;  %p1053_p2 = scmp.lt.u32.totalorder %s1051_s26, %s1046_s23 }
  0x2c   : > { %p1049_p11 = pnand %p1048_p5, %p1047_p4  ;;  %p1055_p8 = scmp.lt.u32.totalorder %s1046_s23, %s1302_s14 }
  0x2d   : > { %p1054_p7 = por %p1053_p2, %p1052_p0 }
  0x2e   : > { %p1050_p12 = pneg %p1049_p11 }
  0x2f   : > { %p1056_p9 = por %p1055_p8, %p1054_p7 }
  0x31   : > { %p1057_p10 = pnand %p1056_p9, %p1050_p12 }
  0x33   : > { %1060 = shalt.err (!%p1057_p10)
}
  0x34   : > { %s1061_s24 = scalar_lea.vmem %s1304_s20, 256  ;;  %s1149_s15 = smov [#allocation2]  }
  0x35   : > { %p1062_p1 = scmp.ne.s32.totalorder %s1304_s20, %s1061_s24  ;;  %s1066_s21 = sshll.u32 %s1149_s15, 4  ;;  %s1067_s21 = int_to_ptr.vmem [resolvable:$false] %s1066_s21 }
  0x36   : > { %s1068_s22 = scalar_lea.vmem %s1067_s21, 512  ;;  %p1069_p6 = scmp.lt.s32.totalorder %s1304_s20, %s1067_s21 }
  0x37   : > { %p1064_p4 = pnand %p1062_p1, %p1048_p5  ;;  %p1070_p0 = scmp.lt.s32.totalorder %s1068_s22, %s1061_s24 }
  0x39   : > { %p1065_p11 = pneg %p1064_p4  ;;  %p1071_p2 = por %p1070_p0, %p1069_p6 }
  0x3b   : > { %p1072_p7 = pnand %p1071_p2, %p1065_p11 }
  0x3d   : > { %1075 = shalt.err (!%p1072_p7)
}
  0x3e   : > { %s1150_s23 = smov 128   ;;  %s1151_s5 = smov 8  }
  0x3f   : > { %962 = dma.hbm_to_vmem [thread:$0]  (!%p1290_p3), %s1302_s14, 256, %s1304_s20, %s1306_s10, %s1150_s23, %s1150_s23, %s1151_s5  }
  0x40   : > { %294 = sbr.rel (%p1271_p13) target bundleno = 1156 (0x484), region = 52  ;;  %s1337_s26 = sand.u32 (!%p1271_p13), 1, %s1138_s28  }
  0x41   : > { %s897_s12 = sshll.u32 (!%p1271_p13), %s1337_s26, 4  ;;  %s297_s13 = scalar_lea.sflag (!%p1271_p13), [#allocation3], %s1337_s26 }
  0x42   : > { %s300_s24 = scalar_lea.vmem (!%p1271_p13), [#allocation2], %s897_s12  ;;  %p1554_p6 = scmp.ne.s32.totalorder (!%p1271_p13), %s1547_s16, 0 }
  0x47   : > { %1121 = dma.done.wait (%p1554_p6), %s297_s13, 256  }
  0x48   : > { %1123 = vsyncadd (%p1554_p6), %s297_s13, 4294967040  ;;  %p1555_p3 = scmp.eq.s32.totalorder %s1232_s9, 0 }
  0x4a   : > { %1125 = dma.done.wait (%p1555_p3), [#allocation5], 32   ;;  %p1556_p13 = pmov %p1555_p3 }
  0x4c   : > { %1127 = vsyncadd (%p1556_p13), [#allocation5], 4294967264 }
  0x4d   : > { %309 = sfence }
  0x4e   : > { %v1351_v0 = vld [vmem:[%s300_s24] sm:$0xff]  ;;  %v1355_v1 = vld [vmem:[%s300_s24 + $0x8] sm:$0xff]  ;;  %v1152_v5 = vmov 0.0|0.0   ;;  %vm1153_vm0 = vmmov 0   ;;  %v1154_v6 = vmov 0.0   ;;  %v353_v7 = vlaneseq  ;;  %s1155_s5 = smov 3  }
  0x4f   : > { %347 = vmax.xlane.f32.xlu1 %v1351_v0  ;;  %340 = vadd.xlane.f32.xlu0 %v1351_v0  ;;  %v381_v2 = vld [vmem:[%s1533_s1] sm:$0xff]  ;;  %v382_v3 = vld [vmem:[%s1533_s1 + $0x8] sm:$0xff]  ;;  %vm364_vm1 = vcmask 130112   ;;  %vm379_vm2 = vcmask 1040384   ;;  %vm390_vm3 = vcmask 130048   ;;  %vm477_vm4 = vcmask 1041408  }
  0x50   : > { %v945_v4 = vpack.c.bf16 %v382_v3, %v381_v2  ;;  %944 = vmatprep.subr.bf16.mxu0 %v1152_v5  ;;  %936 = vmatprep.mubr.msk.f32.mxu0 %vm1153_vm0, %v1154_v6  ;;  %v354_v8 = vand.u32 127, %v353_v7  ;;  %v1365_v10 = vshrl.u32 %v353_v7, 7  ;;  %v465_v26 = vld [vmem:[%s1535_s3] sm:$0x3]  ;;  %vm473_vm5 = vcmask 15360   ;;  %s907_s13 = sld [smem:[#allocation6 + $0x1]] }
  0x51   : > { %939 = vmatprep.subr.mxu1 %v1154_v6  ;;  %941 = vmatprep.mubr.msk.f32.mxu1 %vm1153_vm0, %v1154_v6  ;;  %v900_v27 = vld [vmem:[%s1534_s2] ss:$0 sm:$0xff]  ;;  %s908_s24 = sld [smem:[#allocation6 + $0x81]]  ;;  %s910_s14 = sld [smem:[#allocation6 + $0x82]]  ;;  %vm594_vm6 = vcmask 23552   ;;  %vm627_vm7 = vcmask 1039360  }
  0x52   : > { %946 = vmatpush3.bf16.msra.mxu0 %v945_v4  ;;  %v359_v9 = vadd.s32 4294967288, %v354_v8  ;;  %v357_v14 = vsub.s32 %v354_v8, %v1365_v10  ;;  %940 = vmatpush3.msk.msra.mxu1 %vm477_vm4, %v465_v26  ;;  %v902_v32 = vld [vmem:[%s1536_s4] ss:$0 sm:$0xff]  ;;  %v563_v41 = vsub.s32 0, %v1365_v10  ;;  %v1156_v4 = vmov 0   ;;  %s1393_s16 = sld [smem:[#allocation6 + $0x2]] }
  0x53   : > { %349 = vmax.xlane.f32.xlu1 %v1355_v1  ;;  %342 = vadd.xlane.f32.xlu0 %v1355_v1  ;;  %s1395_s19 = sld [smem:[#allocation6]]  ;;  %s1399_s20 = sld [smem:[#allocation6 + $0x83]]  ;;  %vm647_vm8 = vcmask 1031168   ;;  %vm667_vm9 = vcmask 1022976   ;;  %vm687_vm10 = vcmask 1014784   ;;  %vm707_vm11 = vcmask 1006592  }
  0x54   : > { %v362_v13 = vsub.s32 %v359_v9, %v1365_v10  ;;  %1020 = vset.pattern.permute.xlu1 %v1156_v4  ;;  %1019 = vset.pattern.permute.xlu0 %v1156_v4  ;;  %s1397_s25 = sld [smem:[#allocation6 + $0x80]]  ;;  %s1405_s10 = sld [smem:[#allocation6 + $0x3]]  ;;  %vm727_vm12 = vcmask 998400  }
  0x55   : > { %s1411_s15 = sld [smem:[#allocation6 + $0x84]]  ;;  %s1425_s22 = sld [smem:[#allocation6 + $0x85]] }
  0x56   : > { %v612_v8 = vstv %s907_s13  ;;  %s1418_s21 = sld [smem:[#allocation6 + $0x4]]  ;;  %s1157_s23 = smov 127  }
  0x57   : > { %v616_v9 = vstv %s908_s24  ;;  %s1437_s13 = sld [smem:[#allocation6 + $0x86]]  ;;  %s1158_s24 = smov 126  }
  0x58   : > { %p1557_p12 = scmp.ne.s32.totalorder %s1548_s17, 0 }
  0x59   : > { %v656_v26 = vstv %s1399_s20  ;;  %s1162_s20 = smov 122  }
  0xdc   : > { %v348_v11 = vpop.xlane.xlu1 %347  ;;  %v341_v12 = vpop.xlane.xlu0 %340 }
  0xdd   : > { %v345_v15 = vmul.f32 0.0078125, %v341_v12  ;;  %v372_v20 = vrot.slane %v348_v11, %v357_v14 }
  0xdf   : > { %v358_v21 = vrot.slane %v345_v15, %v357_v14  ;;  %v636_v14 = vstv %s910_s14  ;;  %s1444_s14 = sld [smem:[#allocation6 + $0x6]] }
  0xe0   : > { %v350_v16 = vpop.xlane.xlu1 %349  ;;  %v343_v17 = vpop.xlane.xlu0 %342 }
  0xe1   : > { %v376_v18 = vrot.slane %v350_v16, %v362_v13  ;;  %v346_v19 = vmul.f32 0.0078125, %v343_v17 }
  0xe3   : > { %v363_v22 = vrot.slane %v346_v19, %v362_v13  ;;  %v377_v23 = vsel %vm364_vm1, %v376_v18, %v372_v20  ;;  %v632_v19 = vstv %s1393_s16  ;;  %v604_v20 = vstv %s1395_s19  ;;  %s1159_s16 = smov 125   ;;  %s1160_s19 = smov 124  }
  0xe5   : > { %v365_v24 = vsel %vm364_vm1, %v363_v22, %v358_v21  ;;  %v607_v21 = vstv %s1397_s25  ;;  %s1161_s25 = smov 123  }
  0xe6   : > { %v380_v25 = vsel %vm379_vm2, %v365_v24, %v377_v23 }
  0xe7   : > { %937 = vmatmul.mubr.msk.f32.vlgmr.msra.gmra.mrb[0].mxu0 %vm390_vm3, %v380_v25 }
 0x1ba   : > { %v460_v28 = vpop.f32.mrb[0].mxu0 }
 0x1bb   : > { %v461_v29 = vadd.f32 %v900_v27, %v460_v28  ;;  %v938_v30 = vpop.f32.mrb[1].mxu0 }
 0x1bd   : > { %v464_v31 = vmax.f32 %v461_v29, 0.0  ;;  %v652_v29 = vstv %s1405_s10 }
 0x1bf   : > { %942 = vmatmul.mubr.msk.f32.vlgmr.msra.gmra.mrb[0].mxu1 %vm473_vm5, %v464_v31 }
 0x292   : > { %v547_v33 = vpop.f32.mrb[0].mxu1 }
 0x293   : > { %v548_v34 = vadd.f32 %v902_v32, %v547_v33  ;;  %v943_v35 = vpop.f32.mrb[1].mxu1 }
 0x295   : > { %v552_v36 = vrot.slane %v548_v34, 1 }
 0x297   : > { %v554_v37 = vadd.f32 %v552_v36, %v548_v34  ;;  %v676_v36 = vstv %s1411_s15  ;;  %s1163_s15 = smov [#allocation7]  }
 0x299   : > { %v905_v38 = vmul.f32 -1.442695, %v554_v37 }
 0x29b   : > { %1021 = vpow2.f32 %v905_v38 }
 0x2a5   : > { %v1022_v39 = vpop.eup %1021 }
 0x2a6   : > { %v558_v40 = vadd.f32 1.0, %v1022_v39 }
 0x2a8   : > { %1023 = vrcp.f32 %v558_v40  ;;  %v672_v40 = vstv %s1418_s21  ;;  %s1080_s21 = sshll.u32 %s1163_s15, 4  ;;  %s1081_s21 = int_to_ptr.vmem [resolvable:$false] %s1080_s21 }
 0x2b2   : > { %v1024_v42 = vpop.eup %1023 }
 0x2b3   : > { %v564_v43 = vrot.slane %v1024_v42, %v563_v41 }
 0x2b5   : > { %570 = vbcast.lane.b32.xlu1 %v564_v43, 264  ;;  %566 = vbcast.lane.b32.xlu0 %v564_v43, 256 }
 0x327   : > { %v571_v44 = vpop.permute.xlu1 %570  ;;  %v567_v45 = vpop.permute.xlu0 %566 }
 0x328   : > { %v573_v46 = vmul.f32 %v571_v44, %v1355_v1  ;;  %v572_v47 = vmul.f32 %v567_v45, %v1351_v0 }
 0x32a   : > { %v574_v48 = vadd.f32 %v573_v46, %v572_v47  ;;  %v583_v49 = vmax.f32 %v572_v47, %v573_v46 }
 0x32c   : > { %v575_v50 = vrot.slane %v574_v48, 4  ;;  %v584_v51 = vrot.slane %v583_v49, 4 }
 0x32e   : > { %v576_v52 = vadd.f32 %v575_v50, %v574_v48  ;;  %v585_v53 = vmax.f32 %v583_v49, %v584_v51 }
 0x330   : > { %v577_v54 = vrot.slane %v576_v52, 2  ;;  %v586_v55 = vrot.slane %v585_v53, 2 }
 0x332   : > { %v578_v56 = vadd.f32 %v577_v54, %v576_v52  ;;  %v587_v58 = vmax.f32 %v585_v53, %v586_v55  ;;  %v716_v54 = vstv %s1437_s13 }
 0x334   : > { %v579_v57 = vrot.slane %v578_v56, 1  ;;  %v588_v61 = vrot.slane %v587_v58, 1 }
 0x336   : > { %v580_v59 = vadd.f32 %v579_v57, %v578_v56  ;;  %v589_v1 = vmax.f32 %v587_v58, %v588_v61  ;;  %v712_v57 = vstv %s1444_s14  ;;  %s337_s14 = scalar_lea.vmem [#allocation7], %s897_s12  ;;  %s791_s12 = scalar_lea.sflag [#allocation4], %s1337_s26 }
 0x338   : > { %v582_v60 = vmul.f32 0.0625, %v580_v59 }
 0x33a   : > { %591 = vrot.lane.b32.xlu1 %v582_v60, %s1155_s5  ;;  %v1383_v62 = vsub.f32 %v572_v47, %v582_v60  ;;  %v1385_v63 = vsub.f32 %v573_v46, %v582_v60  ;;  %v696_v46 = vstv %s1425_s22  ;;  %s1082_s22 = scalar_lea.vmem %s1081_s21, 512 }
 0x33c   : > { %v739_v0 = vmul.f32 %v1383_v62, %v1383_v62  ;;  %v740_v2 = vmul.f32 %v1385_v63, %v1385_v63 }
 0x33e   : > { %598 = vrot.lane.b32.xlu1 %v589_v1, %s1155_s5  ;;  %v1391_v3 = vadd.f32 %v740_v2, %v739_v0  ;;  %s1430_s5 = sld [smem:[#allocation6 + $0x5]] }
 0x344   : > { %v692_v49 = vstv %s1430_s5 }
 0x3ac   : > { %v592_v5 = vpop.permute.xlu1 %591 }
 0x3ad   : > { %v1401_v6 = vsel %vm594_vm6, 0.0, %v592_v5  ;;  %v1403_v7 = vsel %vm594_vm6, %v592_v5, 0.0  ;;  %v761_v5 = vld [vmem:[%s1538_s6 + $0x8] sm:$0xff] }
 0x3ae   : > { %v614_v15 = vmul.f32 %v612_v8, %v1403_v7  ;;  %v613_v17 = vmul.f32 %v612_v8, %v1401_v6  ;;  %v634_v27 = vmul.f32 %v632_v19, %v1403_v7  ;;  %v633_v28 = vmul.f32 %v632_v19, %v1401_v6  ;;  %v760_v8 = vld [vmem:[%s1538_s6] sm:$0xff] }
 0x3af   : > { %v605_v30 = vmul.f32 %v604_v20, %v1401_v6  ;;  %v654_v38 = vmul.f32 %v652_v29, %v1403_v7  ;;  %v653_v39 = vmul.f32 %v652_v29, %v1401_v6  ;;  %v674_v47 = vmul.f32 %v672_v40, %v1403_v7 }
 0x3b0   : > { %v599_v11 = vpop.permute.xlu1 %598  ;;  %v673_v48 = vmul.f32 %v672_v40, %v1401_v6  ;;  %v694_v55 = vmul.f32 %v692_v49, %v1403_v7  ;;  %v693_v56 = vmul.f32 %v692_v49, %v1401_v6  ;;  %v714_v0 = vmul.f32 %v712_v57, %v1403_v7  ;;  %v774_v7 = vld [vmem:[%s1539_s7] sm:$0xff] }
 0x3b1   : > { %v1407_v12 = vsel %vm594_vm6, 0.0, %v599_v11  ;;  %v1409_v13 = vsel %vm594_vm6, %v599_v11, 0.0  ;;  %v713_v1 = vmul.f32 %v712_v57, %v1401_v6  ;;  %v775_v6 = vld [vmem:[%s1539_s7 + $0x8] sm:$0xff] }
 0x3b2   : > { %v618_v16 = vmul.f32 %v616_v9, %v1409_v13  ;;  %v617_v18 = vmul.f32 %v616_v9, %v1407_v12  ;;  %v638_v24 = vmul.f32 %v636_v14, %v1409_v13  ;;  %v637_v25 = vmul.f32 %v636_v14, %v1407_v12 }
 0x3b3   : > { %v608_v31 = vmul.f32 %v607_v21, %v1407_v12  ;;  %v658_v34 = vmul.f32 %v656_v26, %v1409_v13  ;;  %v657_v35 = vmul.f32 %v656_v26, %v1407_v12  ;;  %v678_v44 = vmul.f32 %v676_v36, %v1409_v13 }
 0x3b4   : > { %v620_v22 = vadd.f32 %v618_v16, %v614_v15  ;;  %v619_v23 = vadd.f32 %v617_v18, %v613_v17  ;;  %v640_v32 = vadd.f32 %v638_v24, %v634_v27  ;;  %v639_v33 = vadd.f32 %v637_v25, %v633_v28 }
 0x3b5   : > { %v1439_v37 = vadd.f32 %v608_v31, %v605_v30  ;;  %v660_v42 = vadd.f32 %v658_v34, %v654_v38  ;;  %v659_v43 = vadd.f32 %v657_v35, %v653_v39  ;;  %v677_v45 = vmul.f32 %v676_v36, %v1407_v12 }
 0x3b6   : > { %625 = vrot.lane.b32.xlu1 %v620_v22, %s1157_s23  ;;  %623 = vrot.lane.b32.xlu0 %v619_v23, %s1157_s23  ;;  %v680_v50 = vadd.f32 %v678_v44, %v674_v47  ;;  %v698_v52 = vmul.f32 %v696_v46, %v1409_v13  ;;  %v697_v53 = vmul.f32 %v696_v46, %v1407_v12  ;;  %v742_v35 = vrot.slane %v1391_v3, 4 }
 0x3b7   : > { %v679_v51 = vadd.f32 %v677_v45, %v673_v48  ;;  %v718_v60 = vmul.f32 %v716_v54, %v1409_v13  ;;  %v717_v61 = vmul.f32 %v716_v54, %v1407_v12 }
 0x3b8   : > { %v700_v58 = vadd.f32 %v698_v52, %v694_v55  ;;  %v699_v59 = vadd.f32 %v697_v53, %v693_v56  ;;  %v743_v36 = vadd.f32 %v742_v35, %v1391_v3 }
 0x3b9   : > { %v720_v2 = vadd.f32 %v718_v60, %v714_v0  ;;  %v719_v4 = vadd.f32 %v717_v61, %v713_v1 }
 0x3ba   : > { %645 = vrot.lane.b32.xlu1 %v640_v32, %s1158_s24  ;;  %643 = vrot.lane.b32.xlu0 %v639_v33, %s1158_s24 }
 0x3be   : > { %665 = vrot.lane.b32.xlu1 %v660_v42, %s1159_s16  ;;  %663 = vrot.lane.b32.xlu0 %v659_v43, %s1159_s16  ;;  %s804_s16 = sshll.u32 %s337_s14, 4  ;;  %s1484_s16 = int_to_ptr.vmem [resolvable:$true] %s804_s16 }
 0x3bf   : > { %p1083_p10 = scmp.lt.s32.totalorder %s1484_s16, %s1081_s21 }
 0x3c2   : > { %685 = vrot.lane.b32.xlu1 %v680_v50, %s1160_s19  ;;  %683 = vrot.lane.b32.xlu0 %v679_v51, %s1160_s19  ;;  %s926_s19 = sshll.u32 %s1232_s9, 8  ;;  %s1076_s9 = scalar_lea.vmem %s1484_s16, 256 }
 0x3c3   : > { %s1489_s10 = scalar_lea.hbm %s1540_s8, %s926_s19  ;;  %p1077_p5 = scmp.ne.s32.totalorder %s1484_s16, %s1076_s9 }
 0x3c4   : > { %p1084_p1 = scmp.lt.s32.totalorder %s1082_s22, %s1076_s9 }
 0x3c5   : > { %p1078_p8 = pnand %p1077_p5, %p1557_p12 }
 0x3c6   : > { %705 = vrot.lane.b32.xlu1 %v700_v58, %s1161_s25  ;;  %703 = vrot.lane.b32.xlu0 %v699_v59, %s1161_s25  ;;  %p1085_p4 = por %p1084_p1, %p1083_p10 }
 0x3c7   : > { %p1079_p9 = pneg %p1078_p8 }
 0x3c9   : > { %p1086_p11 = pnand %p1085_p4, %p1079_p9 }
 0x3ca   : > { %725 = vrot.lane.b32.xlu1 %v720_v2, %s1162_s20  ;;  %723 = vrot.lane.b32.xlu0 %v719_v4, %s1162_s20 }
 0x3ce   : > { %769 = vperm.xlu1 %1020, %v761_v5   ;;  %764 = vperm.xlu0 %1019, %v760_v8  }
 0x3d2   : > { %778 = vperm.xlu1 %1020, %v774_v7   ;;  %783 = vperm.xlu0 %1019, %v775_v6  }
 0x428   : > { %v626_v9 = vpop.permute.xlu1 %625  ;;  %v624_v11 = vpop.permute.xlu0 %623 }
 0x429   : > { %v628_v16 = vsel %vm627_vm7, %v624_v11, %v626_v9 }
 0x42a   : > { %v630_v18 = vadd.f32 %v628_v16, %v1439_v37  ;;  %v744_v37 = vrot.slane %v743_v36, 2 }
 0x42c   : > { %v646_v12 = vpop.permute.xlu1 %645  ;;  %v644_v13 = vpop.permute.xlu0 %643  ;;  %v745_v40 = vadd.f32 %v744_v37, %v743_v36 }
 0x42d   : > { %v648_v17 = vsel %vm647_vm8, %v644_v13, %v646_v12 }
 0x42e   : > { %v650_v22 = vadd.f32 %v648_v17, %v630_v18  ;;  %v746_v42 = vrot.slane %v745_v40, 1 }
 0x430   : > { %v666_v14 = vpop.permute.xlu1 %665  ;;  %v664_v15 = vpop.permute.xlu0 %663  ;;  %v747_v43 = vadd.f32 %v746_v42, %v745_v40 }
 0x431   : > { %v668_v21 = vsel %vm667_vm9, %v664_v15, %v666_v14 }
 0x432   : > { %v670_v24 = vadd.f32 %v668_v21, %v650_v22  ;;  %v748_v46 = vmul.f32 0.0625, %v747_v43 }
 0x434   : > { %v686_v19 = vpop.permute.xlu1 %685  ;;  %v684_v20 = vpop.permute.xlu0 %683 }
 0x435   : > { %v688_v23 = vsel %vm687_vm10, %v684_v20, %v686_v19 }
 0x436   : > { %v690_v28 = vadd.f32 %v688_v23, %v670_v24 }
 0x438   : > { %v706_v25 = vpop.permute.xlu1 %705  ;;  %v704_v26 = vpop.permute.xlu0 %703 }
 0x439   : > { %v708_v27 = vsel %vm707_vm11, %v704_v26, %v706_v25 }
 0x43a   : > { %v710_v29 = vadd.f32 %v708_v27, %v690_v28 }
 0x43c   : > { %v726_v30 = vpop.permute.xlu1 %725  ;;  %v724_v31 = vpop.permute.xlu0 %723 }
 0x43d   : > { %v728_v32 = vsel %vm727_vm12, %v724_v31, %v726_v30 }
 0x43e   : > { %v730_v33 = vadd.f32 %v728_v32, %v710_v29 }
 0x440   : > { %v919_v34 = vmul.f32 -1.442695, %v730_v33 }
 0x442   : > { %1025 = vpow2.f32 %v919_v34 }
 0x44c   : > { %v1026_v38 = vpop.eup %1025 }
 0x44d   : > { %v734_v39 = vadd.f32 1.0, %v1026_v38  ;;  %v770_v51 = vpop.permute.xlu1 %769  ;;  %v765_v52 = vpop.permute.xlu0 %764 }
 0x44f   : > { %1027 = vrcp.f32 %v734_v39 }
 0x451   : > { %v779_v57 = vpop.permute.xlu1 %778  ;;  %v784_v10 = vpop.permute.xlu0 %783 }
 0x459   : > { %v1028_v44 = vpop.eup %1027 }
 0x45a   : > { %v749_v45 = vmul.f32 %v1028_v44, %v1028_v44 }
 0x45c   : > { %v750_v47 = vmul.f32 %v749_v45, %v748_v46 }
 0x45e   : > { %v751_v48 = vadd.f32 1e-05, %v750_v47 }
 0x460   : > { %1029 = vrsqrt.f32 %v751_v48 }
 0x46a   : > { %v1030_v49 = vpop.eup %1029 }
 0x46b   : > { %v753_v50 = vmul.f32 %v1030_v49, %v1028_v44 }
 0x46d   : > { %v757_v3 = vrot.slane %v753_v50, %v563_v41 }
 0x46f   : > { %v759_v53 = vmul.f32 %v757_v3, %v1385_v63  ;;  %v758_v54 = vmul.f32 %v757_v3, %v1383_v62 }
 0x471   : > { %v773_v55 = vmul.f32 %v770_v51, %v759_v53  ;;  %v772_v56 = vmul.f32 %v765_v52, %v758_v54 }
 0x473   : > { %v786_v41 = vadd.f32 %v779_v57, %v772_v56  ;;  %v787_v62 = vadd.f32 %v784_v10, %v773_v55 }
 0x475   : > { %788 = vst [vmem:[%s337_s14] sm:$0xff] %v786_v41  ;;  %789 = vst [vmem:[%s337_s14 + $0x8] sm:$0xff] %v787_v62 }
 0x476   : > { %1089 = shalt.err (!%p1086_p11)
}
 0x477   : > { %s1090_s23 = scalar_lea.hbm %s1489_s10, 256  ;;  %s1094_s24 = scalar_lea.hbm %s1540_s8, 1024 }
 0x478   : > { %p1091_p0 = scmp.ne.s32.totalorder %s1489_s10, %s1090_s23  ;;  %p1095_p6 = scmp.lt.u32.totalorder %s1489_s10, %s1540_s8 }
 0x479   : > { %p1096_p3 = scmp.lt.u32.totalorder %s1094_s24, %s1090_s23  ;;  %p1098_p5 = scmp.lt.u32.totalorder %s1090_s23, %s1489_s10 }
 0x47a   : > { %p1092_p2 = pnand %p1091_p0, %p1557_p12 }
 0x47b   : > { %p1097_p13 = por %p1096_p3, %p1095_p6 }
 0x47c   : > { %p1093_p7 = pneg %p1092_p2 }
 0x47d   : > { %p1099_p8 = por %p1098_p5, %p1097_p13 }
 0x47f   : > { %p1100_p9 = pnand %p1099_p8, %p1093_p7 }
 0x481   : > { %1103 = shalt.err (!%p1100_p9)
}
 0x482   : > { %s1164_s25 = smov 128   ;;  %s1165_s20 = smov 8  }
 0x483   : > { %953 = dma.vmem_to_hbm [thread:$0]  (%p1557_p12), %s1484_s16, 256, %s1489_s10, %s791_s12, %s1164_s25, %s1164_s25, %s1165_s20  }
 0x484 PF: > { %p970_p10 = scmp.ge.s32.totalorder %s1146_s30, 2  ;;  %s819_s9 = sand.u32 1, %s1134_s27  }
 0x485   : > { %p1558_p1 = scmp.ne.s32.totalorder %s1549_s18, 0  ;;  %s820_s15 = scalar_lea.sflag [#allocation4], %s819_s9 }
 0x487   : > { %p964_p4 = pnand %p970_p10, %p1558_p1 }
 0x489   : > { %1129 = dma.done.wait (!%p964_p4), %s820_s15, 256  }
 0x48a   : > { %1131 = vsyncadd (!%p964_p4), %s820_s15, 4294967040  ;;  %s1559_s21 = sld [smem:[#allocation11_spill]]  ;;  %p22_p11 = scmp.ge.s32.totalorder %s1236_s11, 6  }
 0x48b   : > { %s1560_s27 = smov %s1138_s28  ;;  %s1561_s28 = smov %s1142_s29 }
 0x48c   : > { %s1563_s30 = smov %s1236_s11  ;;  %24 = sbr.rel (!%p22_p11) target bundleno = 8 (0x8), region = 102 }
 0x490   : > { %s1562_s29 = smov %s1559_s21 }
 0x493   :  { %825 = vsyncpa [#allocation3], 1 }
 0x494   :  { %827 = vsyncpa [#allocation3 + $0x1], 1 }
 0x495   :  { %828 = vsyncpa [#allocation4], 1 }
 0x496   :  { %830 = vsyncpa [#allocation4 + $0x1], 1 }
 0x497   :  { %831 = vsyncpa [#allocation5], 1 }
 0x498   :  { %833 = vsyncpa [#allocation5 + $0x1], 1 }

</bundles_post_ra>
